<compile_context>
chip_gen: v7x
topology: tpu7x:2x2x1
jax: 0.10.0
libtpu: 0.0.40
codegen_flags: <defaults>
</compile_context>

<pallas_src>
import functools

import jax
import jax.numpy as jnp
import numpy as np
from jax import lax
from jax.experimental import pallas as pl
from jax.experimental.pallas import tpu as pltpu


# ---------------------------------------------------------------------------
# Pallas kernel: single invocation, in-kernel loop over observations.
# ---------------------------------------------------------------------------
def _gru_ode_recurrence_kernel(
    # inputs
    steps_ref,      # SMEM (S,) int32 : Euler sub-steps per observation
    gx_ref,         # VMEM (S, B, 3*Hp): precomputed x-side gate pre-activations
    w_rz_ref,       # VMEM (Hp, 2*Hp)  : [o_whr | o_whz]  (autonomous ODE cell)
    w_hh_ref,       # VMEM (Hp, Hp)    : o_whh
    w_h3_ref,       # VMEM (Hp, 3*Hp)  : [whr | whz | whn] (torch GRU hidden path)
    bhn_ref,        # VMEM (1, Hp)     : bhn (must stay inside r*(...))
    # outputs
    out_ref,        # VMEM (S, B, Hp)
    # scratch
    h_sc,           # VMEM (B, Hp) persistent hidden state
    *,
    delta_t,
    hp,
    seq,
):
    h_sc[...] = jnp.zeros_like(h_sc)

    @pl.loop(0, seq)
    def _(idx):
        # ---- Euler ODE steps with the autonomous GRU-ODE cell (fused r|z) ----
        def euler_body(_, h):
            rz = jnp.dot(h, w_rz_ref[...], preferred_element_type=jnp.float32)
            r = jax.nn.sigmoid(rz[:, :hp])
            z = jax.nn.sigmoid(rz[:, hp:])
            u = jnp.tanh(
                jnp.dot(r * h, w_hh_ref[...], preferred_element_type=jnp.float32))
            return h + delta_t * (1.0 - z) * (u - h)

        n_steps = steps_ref[idx]
        h = lax.fori_loop(0, n_steps, euler_body, h_sc[...])

        # ---- torch.nn.GRU cell, single time step (one fused hidden matmul) ----
        gx = gx_ref[idx]                                   # (B, 3*Hp) x-side, biases folded
        gh = jnp.dot(h, w_h3_ref[...], preferred_element_type=jnp.float32)
        r = jax.nn.sigmoid(gx[:, :hp] + gh[:, :hp])
        z = jax.nn.sigmoid(gx[:, hp:2 * hp] + gh[:, hp:2 * hp])
        n = jnp.tanh(gx[:, 2 * hp:] + r * (gh[:, 2 * hp:] + bhn_ref[...]))
        h_new = (1.0 - z) * n + z * h

        h_sc[...] = h_new
        out_ref[idx] = h_new     # VMEM-resident output slab; one HBM DMA at kernel end


# ---------------------------------------------------------------------------
# Host-side replication of the PyTorch while-loop step counts (float32 accum,
# matching torch's 0-d float32 tensor arithmetic).
# ---------------------------------------------------------------------------
def _compute_euler_steps(times_row, delta_t):
    dt = np.float32(delta_t)
    current_time = np.float32(times_row[0]) - np.float32(1.0)
    steps = []
    for obs_time in np.asarray(times_row, dtype=np.float32):
        n = 0
        while current_time < obs_time - np.float32(0.001) * dt:
            current_time = np.float32(current_time + dt)
            n += 1
        steps.append(n)
    return np.asarray(steps, dtype=np.int32)


# ---------------------------------------------------------------------------
# Wrapper (PyTorch layout in/out).
# ---------------------------------------------------------------------------
def first_ode_network_forward(H, times, params, delta_t):
    """H: (batch, seq, input_size); times: numpy (1, seq). Returns (batch, seq, hidden)."""
    B, S, _ = H.shape
    hidden = params["o_whr"].shape[0]
    HP = ((hidden + 127) // 128) * 128          # lane-padded hidden/gate width

    steps = jnp.asarray(_compute_euler_steps(np.asarray(times)[0], delta_t))

    # ---- x_model hoisted out of the recurrence (one well-shaped matmul) -----
    HH = (jnp.maximum(H @ params["w1"] + params["b1"], 0.0)
          @ params["w2"] + params["b2"])                        # (B, S, G)

    # ---- input-side GRU gate pre-activations, paired biases pre-summed ------
    gxr = HH @ params["wir"] + (params["bir"] + params["bhr"])
    gxz = HH @ params["wiz"] + (params["biz"] + params["bhz"])
    gxn = HH @ params["win"] + params["bin"]                    # bhn stays inside r*(...)

    def pad_last(a):
        return jnp.pad(a, [(0, 0)] * (a.ndim - 1) + [(0, HP - a.shape[-1])])

    GX = jnp.concatenate([pad_last(gxr), pad_last(gxz), pad_last(gxn)], axis=-1)
    GX = jnp.transpose(GX, (1, 0, 2)).astype(jnp.float32)       # (S, B, 3*HP)

    def pad2(w):  # (hidden, hidden) -> (HP, HP), zero padded
        return jnp.pad(w, ((0, HP - w.shape[0]), (0, HP - w.shape[1])))

    W_rz = jnp.concatenate([pad2(params["o_whr"]), pad2(params["o_whz"])], axis=-1)
    W_hh = pad2(params["o_whh"])
    W_h3 = jnp.concatenate(
        [pad2(params["whr"]), pad2(params["whz"]), pad2(params["whn"])], axis=-1)
    bhn_p = pad_last(params["bhn"]).astype(jnp.float32)         # (1, HP)

    # NOTE(v5e): casting W_* / GX to bf16 (keeping f32 accumulation) would ~3x MXU
    # throughput there; kept f32 here to match the PyTorch forward numerics.
    # NOTE(v7x): if batch grows, shard B across the two TensorCores (core-parallel
    # leading grid axis); at B=2 the single-core serial recurrence is optimal.

    kernel = functools.partial(
        _gru_ode_recurrence_kernel, delta_t=float(delta_t), hp=HP, seq=S)

    out_pad = pl.pallas_call(
        kernel,
        out_shape=jax.ShapeDtypeStruct((S, B, HP), jnp.float32),
        in_specs=[
            pl.BlockSpec(memory_space=pltpu.MemorySpace.SMEM),   # steps
            pl.BlockSpec(memory_space=pltpu.MemorySpace.VMEM),   # GX
            pl.BlockSpec(memory_space=pltpu.MemorySpace.VMEM),   # W_rz
            pl.BlockSpec(memory_space=pltpu.MemorySpace.VMEM),   # W_hh
            pl.BlockSpec(memory_space=pltpu.MemorySpace.VMEM),   # W_h3
            pl.BlockSpec(memory_space=pltpu.MemorySpace.VMEM),   # bhn
        ],
        out_specs=pl.BlockSpec(memory_space=pltpu.MemorySpace.VMEM),
        scratch_shapes=[pltpu.VMEM((B, HP), jnp.float32)],
    )(steps, GX, W_rz, W_hh, W_h3, bhn_p)

    # (S, B, HP) -> (B, S, hidden)
    return jnp.transpose(out_pad, (1, 0, 2))[:, :, :hidden]


# ---------------------------------------------------------------------------
# Pure-JAX reference (mirrors the PyTorch forward exactly; same host-side
# Euler step counts so trip counts are identical by construction).
# ---------------------------------------------------------------------------
def reference_forward(H, times, params, delta_t):
    B, S, _ = H.shape
    hidden = params["o_whr"].shape[0]
    steps = _compute_euler_steps(np.asarray(times)[0], delta_t)
    HH = (jnp.maximum(H @ params["w1"] + params["b1"], 0.0)
          @ params["w2"] + params["b2"])
    out = np.zeros((B, S, hidden), dtype=np.float32)
    h = jnp.zeros((B, hidden), dtype=jnp.float32)
    for idx in range(S):
        for _ in range(int(steps[idx])):
            r = jax.nn.sigmoid(h @ params["o_whr"])
            z = jax.nn.sigmoid(h @ params["o_whz"])
            u = jnp.tanh((r * h) @ params["o_whh"])
            h = h + delta_t * (1.0 - z) * (u - h)
        x = HH[:, idx, :]
        r = jax.nn.sigmoid(x @ params["wir"] + params["bir"] + h @ params["whr"] + params["bhr"])
        z = jax.nn.sigmoid(x @ params["wiz"] + params["biz"] + h @ params["whz"] + params["bhz"])
        n = jnp.tanh(x @ params["win"] + params["bin"] + r * (h @ params["whn"] + params["bhn"]))
        h = (1.0 - z) * n + z * h
        out[:, idx, :] = np.asarray(h)
    return jnp.asarray(out)


# ---------------------------------------------------------------------------
# Deterministic parameter construction (torch Linear weights are (out, in);
# stored pre-transposed as (in, out) so the math is x @ W).
# ---------------------------------------------------------------------------
def make_params(key, input_size, x_hidden, gru_input_size, hidden_size):
    assert gru_input_size == hidden_size, "forward() implies gru_input_size == hidden_size"
    ks = jax.random.split(key, 20)
    s = 0.2

    def mat(k, shape):
        return (s * jax.random.normal(k, shape)).astype(jnp.float32)

    return {
        # x_model
        "w1": mat(ks[0], (input_size, x_hidden)),
        "b1": mat(ks[1], (1, x_hidden)),
        "w2": mat(ks[2], (x_hidden, gru_input_size)),
        "b2": mat(ks[3], (1, gru_input_size)),
        # FullGRUODECell_Autonomous (bias-free linears)
        "o_whr": mat(ks[4], (hidden_size, hidden_size)),
        "o_whz": mat(ks[5], (hidden_size, hidden_size)),
        "o_whh": mat(ks[6], (hidden_size, hidden_size)),
        # torch.nn.GRU, gate order (r, z, n), split per gate
        "wir": mat(ks[7], (gru_input_size, hidden_size)),
        "wiz": mat(ks[8], (gru_input_size, hidden_size)),
        "win": mat(ks[9], (gru_input_size, hidden_size)),
        "whr": mat(ks[10], (hidden_size, hidden_size)),
        "whz": mat(ks[11], (hidden_size, hidden_size)),
        "whn": mat(ks[12], (hidden_size, hidden_size)),
        "bir": mat(ks[13], (1, hidden_size)),
        "biz": mat(ks[14], (1, hidden_size)),
        "bin": mat(ks[15], (1, hidden_size)),
        "bhr": mat(ks[16], (1, hidden_size)),
        "bhz": mat(ks[17], (1, hidden_size)),
        "bhn": mat(ks[18], (1, hidden_size)),
    }


if __name__ == "__main__":
    # Small shapes consistent with the module.
    batch, seq = 2, 8
    input_size, x_hidden = 4, 16
    gru_input_size = hidden_size = 32
    delta_t = 0.5

    key = jax.random.PRNGKey(0)
    k_h, k_p = jax.random.split(key)

    H = (0.5 * jax.random.normal(k_h, (batch, seq, input_size))).astype(jnp.float32)
    # irregular observation times -> data-dependent numbers of Euler steps
    times = np.array([[0.5, 1.0, 2.0, 2.5, 3.5, 4.0, 5.5, 6.0]], dtype=np.float32)

    params = make_params(k_p, input_size, x_hidden, gru_input_size, hidden_size)

    out = first_ode_network_forward(H, times, params, delta_t)
    out = jax.block_until_ready(out)

    ref = reference_forward(H, times, params, delta_t)
    np.testing.assert_allclose(np.asarray(out), np.asarray(ref), rtol=1e-3, atol=1e-3)

    print("KERNEL_OK")
</pallas_src>

<mosaic_0001>
module attributes {stable_mosaic.version = 11 : i64} {
  func.func @_gru_ode_recurrence_kernel(%arg0: memref<8xi32, #tpu.memory_space<smem>>, %arg1: memref<8x2x384xf32, #tpu.memory_space<vmem>>, %arg2: memref<128x256xf32, #tpu.memory_space<vmem>>, %arg3: memref<128x128xf32, #tpu.memory_space<vmem>>, %arg4: memref<128x384xf32, #tpu.memory_space<vmem>>, %arg5: memref<1x128xf32, #tpu.memory_space<vmem>>, %arg6: memref<8x2x128xf32, #tpu.memory_space<vmem>>, %arg7: memref<2x128xf32, #tpu.memory_space<vmem>>) attributes {dimension_semantics = [], scalar_prefetch = 0 : i64, scratch_operands = 1 : i64, tpu.core_type = #tpu.core_type<tc>} {
    %cst = arith.constant 0.000000e+00 : f32
    %0 = vector.broadcast %cst : f32 to vector<2x128xf32>
    %c0 = arith.constant 0 : index
    %c0_0 = arith.constant 0 : index
    %1 = vector.load %arg7[%c0, %c0_0] : memref<2x128xf32, #tpu.memory_space<vmem>>, vector<2x128xf32>
    tpu.vector_store %arg7[%c0, %c0_0], %0 {strides = array<i32>} : memref<2x128xf32, #tpu.memory_space<vmem>>, vector<2x128xf32>,
    %c0_i32 = arith.constant 0 : i32
    %c8_i32 = arith.constant 8 : i32
    %2 = arith.addi %c0_i32, %c8_i32 : i32
    %c1_i32 = arith.constant 1 : i32
    scf.for %arg8 = %c0_i32 to %2 step %c1_i32  : i32 {
      %c1_i32_2 = arith.constant 1 : i32
      %3 = arith.muli %arg8, %c1_i32_2 : i32
      %c0_i32_3 = arith.constant 0 : i32
      %4 = arith.addi %c0_i32_3, %3 : i32
      %5 = arith.index_cast %4 : i32 to index
      %6 = memref.load %arg0[%5] : memref<8xi32, #tpu.memory_space<smem>>
      %c0_4 = arith.constant 0 : index
      %c0_5 = arith.constant 0 : index
      %7 = vector.load %arg7[%c0_4, %c0_5] : memref<2x128xf32, #tpu.memory_space<vmem>>, vector<2x128xf32>
      %c0_i32_6 = arith.constant 0 : i32
      %8 = arith.subi %6, %c0_i32_6 : i32
      %9 = arith.addi %c0_i32_6, %8 : i32
      %c1_i32_7 = arith.constant 1 : i32
      %10 = scf.for %arg9 = %c0_i32_6 to %9 step %c1_i32_7 iter_args(%arg10 = %7) -> (vector<2x128xf32>)  : i32 {
        %c0_22 = arith.constant 0 : index
        %c0_23 = arith.constant 0 : index
        %50 = vector.load %arg2[%c0_22, %c0_23] : memref<128x256xf32, #tpu.memory_space<vmem>>, vector<128x256xf32>
        %cst_24 = arith.constant dense<0.000000e+00> : vector<2x256xf32>
        %51 = tpu.matmul %arg10, %50, %cst_24 {dimension_numbers = #tpu.dot_dimension_numbers<[1], [0], [0], [1], [0, 0, 1, 1], [], []>} : vector<2x128xf32>, vector<128x256xf32>, vector<2x256xf32> -> vector<2x256xf32>
        %52 = vector.extract_strided_slice %51 {offsets = [0, 0], sizes = [2, 128], strides = [1, 1]} : vector<2x256xf32> to vector<2x128xf32>
        %53 = arith.negf %52 : vector<2x128xf32>
        %54 = math.exp %53 : vector<2x128xf32>
        %cst_25 = arith.constant 1.000000e+00 : f32
        %55 = vector.broadcast %cst_25 : f32 to vector<2x128xf32>
        %56 = arith.addf %55, %54 : vector<2x128xf32>
        %57 = arith.divf %55, %56 : vector<2x128xf32>
        %58 = vector.extract_strided_slice %51 {offsets = [0, 128], sizes = [2, 128], strides = [1, 1]} : vector<2x256xf32> to vector<2x128xf32>
        %59 = arith.negf %58 : vector<2x128xf32>
        %60 = math.exp %59 : vector<2x128xf32>
        %cst_26 = arith.constant 1.000000e+00 : f32
        %61 = vector.broadcast %cst_26 : f32 to vector<2x128xf32>
        %62 = arith.addf %61, %60 : vector<2x128xf32>
        %63 = arith.divf %61, %62 : vector<2x128xf32>
        %64 = arith.mulf %57, %arg10 : vector<2x128xf32>
        %c0_27 = arith.constant 0 : index
        %c0_28 = arith.constant 0 : index
        %65 = vector.load %arg3[%c0_27, %c0_28] : memref<128x128xf32, #tpu.memory_space<vmem>>, vector<128x128xf32>
        %cst_29 = arith.constant dense<0.000000e+00> : vector<2x128xf32>
        %66 = tpu.matmul %64, %65, %cst_29 {dimension_numbers = #tpu.dot_dimension_numbers<[1], [0], [0], [1], [0, 0, 1, 1], [], []>} : vector<2x128xf32>, vector<128x128xf32>, vector<2x128xf32> -> vector<2x128xf32>
        %67 = math.tanh %66 : vector<2x128xf32>
        %cst_30 = arith.constant 1.000000e+00 : f32
        %68 = vector.broadcast %cst_30 : f32 to vector<2x128xf32>
        %69 = arith.subf %68, %63 : vector<2x128xf32>
        %cst_31 = arith.constant 5.000000e-01 : f32
        %70 = vector.broadcast %cst_31 : f32 to vector<2x128xf32>
        %71 = arith.mulf %70, %69 : vector<2x128xf32>
        %72 = arith.subf %67, %arg10 : vector<2x128xf32>
        %73 = arith.mulf %71, %72 : vector<2x128xf32>
        %74 = arith.addf %arg10, %73 : vector<2x128xf32>
        scf.yield %74 : vector<2x128xf32>
      }
      %11 = arith.index_cast %4 : i32 to index
      %c0_8 = arith.constant 0 : index
      %c0_9 = arith.constant 0 : index
      %12 = vector.load %arg1[%11, %c0_8, %c0_9] : memref<8x2x384xf32, #tpu.memory_space<vmem>>, vector<1x2x384xf32>
      %13 = vector.shape_cast %12 : vector<1x2x384xf32> to vector<2x384xf32>
      %c0_10 = arith.constant 0 : index
      %c0_11 = arith.constant 0 : index
      %14 = vector.load %arg4[%c0_10, %c0_11] : memref<128x384xf32, #tpu.memory_space<vmem>>, vector<128x384xf32>
      %cst_12 = arith.constant dense<0.000000e+00> : vector<2x384xf32>
      %15 = tpu.matmul %10, %14, %cst_12 {dimension_numbers = #tpu.dot_dimension_numbers<[1], [0], [0], [1], [0, 0, 1, 1], [], []>} : vector<2x128xf32>, vector<128x384xf32>, vector<2x384xf32> -> vector<2x384xf32>
      %16 = vector.extract_strided_slice %13 {offsets = [0, 0], sizes = [2, 128], strides = [1, 1]} : vector<2x384xf32> to vector<2x128xf32>
      %17 = vector.extract_strided_slice %15 {offsets = [0, 0], sizes = [2, 128], strides = [1, 1]} : vector<2x384xf32> to vector<2x128xf32>
      %18 = arith.addf %16, %17 : vector<2x128xf32>
      %19 = arith.negf %18 : vector<2x128xf32>
      %20 = math.exp %19 : vector<2x128xf32>
      %cst_13 = arith.constant 1.000000e+00 : f32
      %21 = vector.broadcast %cst_13 : f32 to vector<2x128xf32>
      %22 = arith.addf %21, %20 : vector<2x128xf32>
      %23 = arith.divf %21, %22 : vector<2x128xf32>
      %24 = vector.extract_strided_slice %13 {offsets = [0, 128], sizes = [2, 128], strides = [1, 1]} : vector<2x384xf32> to vector<2x128xf32>
      %25 = vector.extract_strided_slice %15 {offsets = [0, 128], sizes = [2, 128], strides = [1, 1]} : vector<2x384xf32> to vector<2x128xf32>
      %26 = arith.addf %24, %25 : vector<2x128xf32>
      %27 = arith.negf %26 : vector<2x128xf32>
      %28 = math.exp %27 : vector<2x128xf32>
      %cst_14 = arith.constant 1.000000e+00 : f32
      %29 = vector.broadcast %cst_14 : f32 to vector<2x128xf32>
      %30 = arith.addf %29, %28 : vector<2x128xf32>
      %31 = arith.divf %29, %30 : vector<2x128xf32>
      %32 = vector.extract_strided_slice %13 {offsets = [0, 256], sizes = [2, 128], strides = [1, 1]} : vector<2x384xf32> to vector<2x128xf32>
      %33 = vector.extract_strided_slice %15 {offsets = [0, 256], sizes = [2, 128], strides = [1, 1]} : vector<2x384xf32> to vector<2x128xf32>
      %c0_15 = arith.constant 0 : index
      %c0_16 = arith.constant 0 : index
      %34 = vector.load %arg5[%c0_15, %c0_16] : memref<1x128xf32, #tpu.memory_space<vmem>>, vector<1x128xf32>
      %35 = vector.broadcast %34 : vector<1x128xf32> to vector<2x128xf32>
      %36 = arith.addf %33, %35 : vector<2x128xf32>
      %37 = arith.mulf %23, %36 : vector<2x128xf32>
      %38 = arith.addf %32, %37 : vector<2x128xf32>
      %39 = math.tanh %38 : vector<2x128xf32>
      %cst_17 = arith.constant 1.000000e+00 : f32
      %40 = vector.broadcast %cst_17 : f32 to vector<2x128xf32>
      %41 = arith.subf %40, %31 : vector<2x128xf32>
      %42 = arith.mulf %41, %39 : vector<2x128xf32>
      %43 = arith.mulf %31, %10 : vector<2x128xf32>
      %44 = arith.addf %42, %43 : vector<2x128xf32>
      %c0_18 = arith.constant 0 : index
      %c0_19 = arith.constant 0 : index
      %45 = vector.load %arg7[%c0_18, %c0_19] : memref<2x128xf32, #tpu.memory_space<vmem>>, vector<2x128xf32>
      tpu.vector_store %arg7[%c0_18, %c0_19], %44 {strides = array<i32>} : memref<2x128xf32, #tpu.memory_space<vmem>>, vector<2x128xf32>,
      %46 = arith.index_cast %4 : i32 to index
      %c0_20 = arith.constant 0 : index
      %c0_21 = arith.constant 0 : index
      %47 = vector.load %arg6[%46, %c0_20, %c0_21] : memref<8x2x128xf32, #tpu.memory_space<vmem>>, vector<1x2x128xf32>
      %48 = vector.shape_cast %47 : vector<1x2x128xf32> to vector<2x128xf32>
      %49 = vector.shape_cast %44 : vector<2x128xf32> to vector<1x2x128xf32>
      tpu.vector_store %arg6[%46, %c0_20, %c0_21], %49 {strides = array<i32>} : memref<8x2x128xf32, #tpu.memory_space<vmem>>, vector<1x2x128xf32>,
    }
    %c8_i32_1 = arith.constant 8 : i32
    return
  }
}

</mosaic_0001>

<bundles_post_ra>
// kernel: tpu_custom_call.1
= control target key start
LH: loop header
LB: loop body
LE: loop exit
PB: predicated region body
PF: predicated region fallthrough
CT: control target
= control target key end

     0   :  { %11 = vsyncpa [#allocation6], 0  ;;  %s1239_s0 = inlined_call_operand.hbm [shape: s32[8], index: 0, kind: input, shape index: {}]   ;;  %s1240_s1 = inlined_call_operand.hbm [shape: f32[8,2,384], index: 1, kind: input, shape index: {}]   ;;  %s1241_s2 = inlined_call_operand.hbm [shape: f32[128,256], index: 2, kind: input, shape index: {}]   ;;  %s1242_s3 = inlined_call_operand.hbm [shape: f32[128,128], index: 3, kind: input, shape index: {}]   ;;  %s1243_s4 = inlined_call_operand.hbm [shape: f32[128,384], index: 4, kind: input, shape index: {}]   ;;  %s1244_s5 = inlined_call_operand.vmem [shape: f32[1,128], index: 5, kind: input, shape index: {}]   ;;  %s1245_s6 = inlined_call_operand.hbm [shape: f32[8,2,128], index: 6, kind: output, shape index: {}]  }
   0x1   :  { %12 = vsyncpa [#allocation4], 0 }
   0x2   :  { %13 = vsyncpa [#allocation9], 0 }
   0x3   :  { %14 = vsyncpa [#allocation12], 0 }
   0x4   :  { %15 = vsyncpa [#allocation5], 0  ;;  %s1044_s21 = smov [#allocation8]   ;;  %s882_s25 = scalar_lea.hbm %s1241_s2, 4096 }
   0x5   :  { %s41_s22 = sshll.u32 %s1044_s21, 4  ;;  %p883_p0 = scmp.ne.s32.totalorder %s1241_s2, %s882_s25  ;;  %s42_s22 = int_to_ptr.vmem [resolvable:$true] %s41_s22 }
   0x6   :  { %p886_p1 = scmp.lt.u32.totalorder %s882_s25, %s1241_s2 }
   0x8   :  { %p888_p2 = pnand %p886_p1, %p883_p0 }
   0xa   :  { %891 = shalt.err (!%p888_p2)
}
   0xb   :  { %s892_s30 = scalar_lea.vmem %s42_s22, 4096  ;;  %p897_p4 = scmp.lt.s32.totalorder %s42_s22, %s42_s22 }
   0xc   :  { %p893_p3 = scmp.ne.s32.totalorder %s42_s22, %s892_s30  ;;  %p898_p5 = scmp.lt.s32.totalorder %s892_s30, %s892_s30 }
   0xe   :  { %p899_p6 = por %p898_p5, %p897_p4 }
  0x10   :  { %p900_p7 = pnand %p899_p6, %p893_p3 }
  0x12   :  { %903 = shalt.err (!%p900_p7)
}
  0x13   :  { %s1045_s7 = smov 256   ;;  %s1046_s8 = smov 16  }
  0x14   :  { %47 = dma.hbm_to_vmem [thread:$0]  %s1241_s2, 4096, %s42_s22, [#allocation9], %s1045_s7, %s1045_s7, %s1046_s8  }
  0x15   :  { %s904_s13 = scalar_lea.hbm %s1239_s0, 16 }
  0x16   :  { %p905_p8 = scmp.ne.s32.totalorder %s1239_s0, %s904_s13  ;;  %p908_p9 = scmp.lt.u32.totalorder %s904_s13, %s1239_s0 }
  0x18   :  { %p910_p10 = pnand %p908_p9, %p905_p8 }
  0x1a   :  { %913 = shalt.err (!%p910_p10)
}
  0x1b   :  { %s1047_s18 = smov [#allocation3]   ;;  %s1048_s2 = smov [#allocation7]  }
  0x1c   :  { %23 = dma.hbm_to_smem %s1239_s0, 16, %s1047_s18, [#allocation6]  }
  0x1d   :  { %s29_s21 = sshll.u32 %s1048_s2, 4  ;;  %s914_s24 = scalar_lea.hbm %s1240_s1, 768  ;;  %s30_s21 = int_to_ptr.vmem [resolvable:$true] %s29_s21 }
  0x1e   :  { %p915_p11 = scmp.ne.s32.totalorder %s1240_s1, %s914_s24  ;;  %p918_p12 = scmp.lt.u32.totalorder %s914_s24, %s1240_s1 }
  0x20   :  { %p920_p13 = pnand %p918_p12, %p915_p11 }
  0x22   :  { %923 = shalt.err (!%p920_p13)
}
  0x23   :  { %s924_s29 = scalar_lea.vmem %s30_s21, 768  ;;  %p929_p1 = scmp.lt.s32.totalorder %s30_s21, %s30_s21 }
  0x24   :  { %p925_p0 = scmp.ne.s32.totalorder %s30_s21, %s924_s29  ;;  %p930_p2 = scmp.lt.s32.totalorder %s924_s29, %s924_s29 }
  0x26   :  { %p931_p3 = por %p930_p2, %p929_p1 }
  0x28   :  { %p932_p4 = pnand %p931_p3, %p925_p0 }
  0x2a   :  { %935 = shalt.err (!%p932_p4)
}
  0x2b   :  { %s1049_s0 = smov 96   ;;  %s1050_s30 = smov 6  }
  0x2c   :  { %35 = dma.hbm_to_vmem [thread:$0]  %s1240_s1, 768, %s30_s21, [#allocation4], %s1049_s0, %s1049_s0, %s1050_s30  }
  0x2d   :  { %s1051_s9 = smov [#allocation10]   ;;  %s936_s13 = scalar_lea.hbm %s1242_s3, 2048 }
  0x2e   :  { %s53_s10 = sshll.u32 %s1051_s9, 4  ;;  %p937_p5 = scmp.ne.s32.totalorder %s1242_s3, %s936_s13  ;;  %s54_s10 = int_to_ptr.vmem [resolvable:$true] %s53_s10 }
  0x2f   :  { %p940_p6 = scmp.lt.u32.totalorder %s936_s13, %s1242_s3 }
  0x31   :  { %p942_p7 = pnand %p940_p6, %p937_p5 }
  0x33   :  { %945 = shalt.err (!%p942_p7)
}
  0x34   :  { %s946_s18 = scalar_lea.vmem %s54_s10, 2048  ;;  %p951_p9 = scmp.lt.s32.totalorder %s54_s10, %s54_s10 }
  0x35   :  { %p947_p8 = scmp.ne.s32.totalorder %s54_s10, %s946_s18  ;;  %p952_p10 = scmp.lt.s32.totalorder %s946_s18, %s946_s18 }
  0x37   :  { %p953_p11 = por %p952_p10, %p951_p9 }
  0x39   :  { %p954_p12 = pnand %p953_p11, %p947_p8 }
  0x3b   :  { %957 = shalt.err (!%p954_p12)
}
  0x3c   :  { %s1052_s1 = smov 128   ;;  %s1053_s19 = smov 8  }
  0x3d   :  { %59 = dma.hbm_to_vmem [thread:$0]  %s1242_s3, 2048, %s54_s10, [#allocation9], %s1052_s1, %s1052_s1, %s1053_s19  }
  0x3e   :  { %s1054_s21 = smov [#allocation11]   ;;  %s958_s25 = scalar_lea.hbm %s1243_s4, 6144 }
  0x3f   :  { %s65_s22 = sshll.u32 %s1054_s21, 4  ;;  %p959_p13 = scmp.ne.s32.totalorder %s1243_s4, %s958_s25  ;;  %s66_s22 = int_to_ptr.vmem [resolvable:$true] %s65_s22 }
  0x40   :  { %p962_p0 = scmp.lt.u32.totalorder %s958_s25, %s1243_s4 }
  0x42   :  { %p964_p1 = pnand %p962_p0, %p959_p13 }
  0x44   :  { %967 = shalt.err (!%p964_p1)
}
  0x45   :  { %s968_s0 = scalar_lea.vmem %s66_s22, 6144  ;;  %p973_p3 = scmp.lt.s32.totalorder %s66_s22, %s66_s22 }
  0x46   :  { %p969_p2 = scmp.ne.s32.totalorder %s66_s22, %s968_s0  ;;  %p974_p4 = scmp.lt.s32.totalorder %s968_s0, %s968_s0 }
  0x48   :  { %p975_p5 = por %p974_p4, %p973_p3 }
  0x4a   :  { %p976_p6 = pnand %p975_p5, %p969_p2 }
  0x4c   :  { %979 = shalt.err (!%p976_p6)
}
  0x4d   :  { %s1055_s3 = smov 384   ;;  %s1056_s30 = smov 24  }
  0x4e   :  { %71 = dma.hbm_to_vmem [thread:$0]  %s1243_s4, 6144, %s66_s22, [#allocation12], %s1055_s3, %s1055_s3, %s1056_s30  }
  0x4f   :  { %1018 = dma.done.wait [#allocation6], 16  }
  0x50   :  { %1019 = vsyncadd [#allocation6], 4294967280 }
  0x51   :  { %1020 = dma.done.wait [#allocation4], 768  }
  0x52   :  { %1021 = vsyncadd [#allocation4], 4294966528 }
  0x53   :  { %1022 = dma.done.wait [#allocation9], 6144  }
  0x54   :  { %1023 = vsyncadd [#allocation9], 4294961152 }
  0x55   :  { %1024 = dma.done.wait [#allocation12], 6144  }
  0x56   :  { %1025 = vsyncadd [#allocation12], 4294961152 }
  0x57   :  { %89 = sfence }
  0x58   :  { %v1057_v0 = vmov 0.0   ;;  %s1162_s9 = smov 0  }
  0x59   :  { %90 = vst [vmem:[#allocation2] sm:$0x3] %v1057_v0 }
  0x5a LB: > { %s1168_s4 = sld [smem:[#allocation3 + %s1030_s9]]  ;;  %s1030_s9 = sphi %s1162_s9, %s96_s9  }
  0x60   : > { %v98_v1 = vld [vmem:[#allocation2] sm:$0x3]   ;;  %p582_p7 = scmp.le.s32.totalorder %s1168_s4, 0 }
  0x61   : > { %v1246_v2 = vmov %v98_v1  ;;  %s1175_s10 = smov (!%p582_p7), 0  }
  0x62   : > { %572 = sbr.rel (%p582_p7) target bundleno = 610 (0x262), region = 74 }
  0x69 LB: >> { %v107_v3 = vld [vmem:[#allocation8 + $0x8] sm:$0xff]  ;;  %v109_v4 = vld [vmem:[#allocation8 + $0x18] sm:$0xff]  ;;  %v106_v5 = vld [vmem:[#allocation8] sm:$0xff]  ;;  %v1058_v10 = vmov 0.0   ;;  %v1059_v11 = vmov 0.0|0.0   ;;  %vm1060_vm0 = vmmov 0   ;;  %s1038_s10 = sphi %s1175_s10, %s102_s10   ;;  %v1034_v1 = vphi %v98_v1, %v1247_v1  }
  0x6a   : >> { %v695_v6 = vpack.c.bf16 %v109_v4, %v107_v3  ;;  %v108_v7 = vld [vmem:[#allocation8 + $0x10] sm:$0xff]  ;;  %v111_v8 = vld [vmem:[#allocation8 + $0x28] sm:$0xff]  ;;  %v113_v9 = vld [vmem:[#allocation8 + $0x38] sm:$0xff]  ;;  %202 = vmatprep.mubr.f32.mxu0 %v1058_v10  ;;  %727 = vmatprep.subr.bf16.mxu1 %v1059_v11  ;;  %s102_s10 = sadd.s32 1, %s1038_s10  }
  0x6b   : >> { %v697_v12 = vpack.c.bf16 %v108_v7, %v106_v5  ;;  %v699_v13 = vpack.c.bf16 %v113_v9, %v111_v8  ;;  %v110_v14 = vld [vmem:[#allocation8 + $0x20] sm:$0xff]  ;;  %v112_v15 = vld [vmem:[#allocation8 + $0x30] sm:$0xff]  ;;  %v115_v16 = vld [vmem:[#allocation8 + $0x48] sm:$0xff]  ;;  %657 = vmatprep.mubr.msk.f32.mxu1 %vm1060_vm0, %v1058_v10  ;;  %p101_p8 = scmp.ge.s32.totalorder %s102_s10, %s1168_s4 }
  0x6c   : >> { %696 = vmatprep.subr.bf16.mxu0 %v695_v6  ;;  %v117_v17 = vld [vmem:[#allocation8 + $0x58] sm:$0xff]  ;;  %v701_v18 = vpack.c.bf16 %v112_v15, %v110_v14  ;;  %v114_v20 = vld [vmem:[#allocation8 + $0x40] sm:$0xff]  ;;  %v116_v21 = vld [vmem:[#allocation8 + $0x50] sm:$0xff] }
  0x6d   : >> { %698 = vmatpush1.bf16.msra.mxu0 %v697_v12  ;;  %v703_v19 = vpack.c.bf16 %v117_v17, %v115_v16  ;;  %v119_v22 = vld [vmem:[#allocation8 + $0x68] sm:$0xff]  ;;  %v121_v23 = vld [vmem:[#allocation8 + $0x78] sm:$0xff]  ;;  %v705_v24 = vpack.c.bf16 %v116_v21, %v114_v20  ;;  %v118_v26 = vld [vmem:[#allocation8 + $0x60] sm:$0xff] }
  0x6e   : >> { %700 = vmatprep.subr.bf16.mxu0 %v699_v13  ;;  %v707_v25 = vpack.c.bf16 %v121_v23, %v119_v22  ;;  %v120_v27 = vld [vmem:[#allocation8 + $0x70] sm:$0xff]  ;;  %v123_v28 = vld [vmem:[#allocation8 + $0x88] sm:$0xff]  ;;  %v125_v29 = vld [vmem:[#allocation8 + $0x98] sm:$0xff] }
  0x6f   : >> { %v222_v30 = vld [vmem:[#allocation10] sm:$0xff]  ;;  %v223_v31 = vld [vmem:[#allocation10 + $0x8] sm:$0xff]  ;;  %v709_v32 = vpack.c.bf16 %v120_v27, %v118_v26  ;;  %v711_v34 = vpack.c.bf16 %v125_v29, %v123_v28  ;;  %v124_v36 = vld [vmem:[#allocation8 + $0x90] sm:$0xff] }
  0x70   : >> { %v728_v33 = vpack.c.bf16 %v223_v31, %v222_v30  ;;  %v122_v35 = vld [vmem:[#allocation8 + $0x80] sm:$0xff]  ;;  %v127_v37 = vld [vmem:[#allocation8 + $0xa8] sm:$0xff]  ;;  %v129_v38 = vld [vmem:[#allocation8 + $0xb8] sm:$0xff] }
  0x71   : >> { %702 = vmatpush1.bf16.msra.mxu0 %v701_v18  ;;  %v713_v39 = vpack.c.bf16 %v124_v36, %v122_v35  ;;  %v715_v40 = vpack.c.bf16 %v129_v38, %v127_v37  ;;  %v126_v41 = vld [vmem:[#allocation8 + $0xa0] sm:$0xff]  ;;  %v128_v42 = vld [vmem:[#allocation8 + $0xb0] sm:$0xff]  ;;  %v131_v43 = vld [vmem:[#allocation8 + $0xc8] sm:$0xff] }
  0x72   : >> { %704 = vmatprep.subr.bf16.mxu0 %v703_v19  ;;  %729 = vmatpush3.bf16.msra.mxu1 %v728_v33  ;;  %v133_v44 = vld [vmem:[#allocation8 + $0xd8] sm:$0xff]  ;;  %v717_v45 = vpack.c.bf16 %v128_v42, %v126_v41  ;;  %v130_v47 = vld [vmem:[#allocation8 + $0xc0] sm:$0xff]  ;;  %v132_v48 = vld [vmem:[#allocation8 + $0xd0] sm:$0xff] }
  0x73   : >> { %730 = vmatprep.subr.bf16.mxu1 %v1059_v11  ;;  %v719_v46 = vpack.c.bf16 %v133_v44, %v131_v43  ;;  %v135_v49 = vld [vmem:[#allocation8 + $0xe8] sm:$0xff]  ;;  %v137_v50 = vld [vmem:[#allocation8 + $0xf8] sm:$0xff]  ;;  %v721_v51 = vpack.c.bf16 %v132_v48, %v130_v47  ;;  %v134_v53 = vld [vmem:[#allocation8 + $0xe0] sm:$0xff] }
  0x74   : >> { %v723_v52 = vpack.c.bf16 %v137_v50, %v135_v49  ;;  %v136_v54 = vld [vmem:[#allocation8 + $0xf0] sm:$0xff]  ;;  %v225_v57 = vld [vmem:[#allocation10 + $0x18] sm:$0xff]  ;;  %v226_v59 = vld [vmem:[#allocation10 + $0x20] sm:$0xff] }
  0x75   : >> { %706 = vmatpush1.bf16.msra.mxu0 %v705_v24  ;;  %v725_v55 = vpack.c.bf16 %v136_v54, %v134_v53  ;;  %v224_v56 = vld [vmem:[#allocation10 + $0x10] sm:$0xff]  ;;  %v227_v60 = vld [vmem:[#allocation10 + $0x28] sm:$0xff]  ;;  %v229_v63 = vld [vmem:[#allocation10 + $0x38] sm:$0xff] }
  0x76   : >> { %708 = vmatprep.subr.bf16.mxu0 %v707_v25  ;;  %v731_v58 = vpack.c.bf16 %v225_v57, %v224_v56  ;;  %v734_v61 = vpack.c.bf16 %v227_v60, %v226_v59  ;;  %v228_v62 = vld [vmem:[#allocation10 + $0x30] sm:$0xff]  ;;  %v230_v2 = vld [vmem:[#allocation10 + $0x40] sm:$0xff]  ;;  %v231_v3 = vld [vmem:[#allocation10 + $0x48] sm:$0xff] }
  0x77   : >> { %v737_v0 = vpack.c.bf16 %v229_v63, %v228_v62  ;;  %v740_v4 = vpack.c.bf16 %v231_v3, %v230_v2  ;;  %v232_v5 = vld [vmem:[#allocation10 + $0x50] sm:$0xff]  ;;  %v233_v6 = vld [vmem:[#allocation10 + $0x58] sm:$0xff]  ;;  %v234_v8 = vld [vmem:[#allocation10 + $0x60] sm:$0xff] }
  0x78   : >> { %732 = vmatpush3.bf16.msra.mxu1 %v731_v58  ;;  %v743_v7 = vpack.c.bf16 %v233_v6, %v232_v5  ;;  %v235_v9 = vld [vmem:[#allocation10 + $0x68] sm:$0xff]  ;;  %v236_v13 = vld [vmem:[#allocation10 + $0x70] sm:$0xff]  ;;  %v237_v14 = vld [vmem:[#allocation10 + $0x78] sm:$0xff] }
  0x79   : >> { %710 = vmatpush1.bf16.msra.mxu0 %v709_v32  ;;  %733 = vmatprep.subr.bf16.mxu1 %v1059_v11  ;;  %v746_v12 = vpack.c.bf16 %v235_v9, %v234_v8  ;;  %v749_v15 = vpack.c.bf16 %v237_v14, %v236_v13 }
  0x7a   : >> { %712 = vmatprep.subr.bf16.mxu0 %v711_v34 }
  0x7c   : >> { %735 = vmatpush3.bf16.msra.mxu1 %v734_v61 }
  0x7d   : >> { %714 = vmatpush1.bf16.msra.mxu0 %v713_v39  ;;  %736 = vmatprep.subr.bf16.mxu1 %v1059_v11 }
  0x7e   : >> { %716 = vmatprep.subr.bf16.mxu0 %v715_v40 }
  0x80   : >> { %738 = vmatpush3.bf16.msra.mxu1 %v737_v0 }
  0x81   : >> { %718 = vmatpush1.bf16.msra.mxu0 %v717_v45  ;;  %739 = vmatprep.subr.bf16.mxu1 %v1059_v11 }
  0x82   : >> { %720 = vmatprep.subr.bf16.mxu0 %v719_v46 }
  0x84   : >> { %741 = vmatpush3.bf16.msra.mxu1 %v740_v4 }
  0x85   : >> { %722 = vmatpush1.bf16.msra.mxu0 %v721_v51  ;;  %742 = vmatprep.subr.bf16.mxu1 %v1059_v11 }
  0x86   : >> { %724 = vmatprep.subr.bf16.mxu0 %v723_v52 }
  0x88   : >> { %744 = vmatpush3.bf16.msra.mxu1 %v743_v7 }
  0x89   : >> { %726 = vmatpush1.bf16.msra.mxu0 %v725_v55  ;;  %745 = vmatprep.subr.bf16.mxu1 %v1059_v11 }
  0x8c   : >> { %203 = vmatmul.mubr.f32.vlgmr.msra.gmra.mrb[0].mxu0 %v1034_v1  ;;  %747 = vmatpush3.bf16.msra.mxu1 %v746_v12 }
  0x8d   : >> { %748 = vmatprep.subr.bf16.mxu1 %v1059_v11 }
  0x90   : >> { %750 = vmatpush3.bf16.msra.mxu1 %v749_v15 }
 0x15f   : >> { %v204_v16 = vpop.f32.mrb[0].mxu0 }
 0x160   : >> { %v583_v17 = vmul.f32 -1.442695, %v204_v16  ;;  %v206_v18 = vpop.f32.mrb[1].mxu0 }
 0x161   : >> { %v584_v23 = vmul.f32 -1.442695, %v206_v18 }
 0x162   : >> { %862 = vpow2.f32 %v583_v17 }
 0x16c   : >> { %v863_v19 = vpop.eup %862 }
 0x16d   : >> { %v212_v20 = vadd.f32 1.0, %v863_v19 }
 0x16f   : >> { %864 = vrcp.f32 %v212_v20 }
 0x170   : >> { %866 = vpow2.f32 %v584_v23 }
 0x179   : >> { %v865_v21 = vpop.eup %864 }
 0x17a   : >> { %v221_v22 = vmul.f32 %v1034_v1, %v865_v21  ;;  %v867_v11 = vpop.eup %866 }
 0x17b   : >> { %v218_v24 = vadd.f32 1.0, %v867_v11 }
 0x17c   : >> { %658 = vmatmul.mubr.f32.vlgmr.msra.gmra.mrb[0].mxu1 %v221_v22 }
 0x17d   : >> { %868 = vrcp.f32 %v218_v24 }
 0x187   : >> { %v869_v10 = vpop.eup %868 }
 0x188   : >> { %v309_v27 = vsub.f32 1.0, %v869_v10 }
 0x18a   : >> { %v310_v29 = vmul.f32 0.5, %v309_v27 }
 0x24f   : >> { %v304_v25 = vpop.f32.mrb[0].mxu1 }
 0x250   : >> { %870 = vtanh.f32 %v304_v25  ;;  %v659_v26 = vpop.f32.mrb[1].mxu1 }
 0x25a   : >> { %v871_v28 = vpop.eup %870 }
 0x25b   : >> { %v311_v30 = vsub.f32 %v871_v28, %v1034_v1  ;;  %104 = sbr.rel (!%p101_p8) target bundleno = 105 (0x69), region = 80 }
 0x25d   : >> { %v312_v31 = vmul.f32 %v311_v30, %v310_v29 }
 0x25f   : >> { %v313_v32 = vadd.f32 %v1034_v1, %v312_v31  }
 0x261   : >> { %v1247_v1 = vmov %v313_v32  ;;  %v1248_v2 = vmov (%p101_p8), %v313_v32 }
 0x262 PF: > { %v319_v33 = vld [vmem:[#allocation11 + $0x8] sm:$0xff]  ;;  %v322_v34 = vld [vmem:[#allocation11 + $0x20] sm:$0xff]  ;;  %v321_v36 = vld [vmem:[#allocation11 + $0x18] sm:$0xff]  ;;  %v1061_v39 = vmov 0.0|0.0   ;;  %v1062_v40 = vmov 0.0   ;;  %vm1063_vm1 = vmmov 0   ;;  %v1042_v2 = vphi %v1246_v2, %v1248_v2  }
 0x263   : > { %v318_v35 = vld [vmem:[#allocation11] sm:$0xff]  ;;  %v751_v1 = vpack.c.bf16 %v322_v34, %v319_v33  ;;  %v325_v37 = vld [vmem:[#allocation11 + $0x38] sm:$0xff]  ;;  %v328_v38 = vld [vmem:[#allocation11 + $0x50] sm:$0xff]  ;;  %783 = vmatprep.subr.bf16.mxu1 %v1061_v39  ;;  %430 = vmatprep.mubr.f32.mxu0 %v1062_v40  ;;  %s590_s11 = smul.u32 6, %s1030_s9  ;;  %s589_s15 = sshll.u32 %s1030_s9, 1 }
 0x264   : > { %v753_v41 = vpack.c.bf16 %v321_v36, %v318_v35  ;;  %v755_v42 = vpack.c.bf16 %v328_v38, %v325_v37  ;;  %v324_v43 = vld [vmem:[#allocation11 + $0x30] sm:$0xff]  ;;  %v327_v44 = vld [vmem:[#allocation11 + $0x48] sm:$0xff]  ;;  %692 = vmatprep.mubr.msk.f32.mxu1 %vm1063_vm1, %v1062_v40  ;;  %v334_v46 = vld [vmem:[#allocation11 + $0x80] sm:$0xff]  ;;  %s543_s16 = scalar_lea.vmem [#allocation13], %s589_s15  ;;  %s96_s9 = sadd.s32 1, %s1030_s9  }
 0x265   : > { %v331_v45 = vld [vmem:[#allocation11 + $0x68] sm:$0xff]  ;;  %752 = vmatprep.subr.bf16.mxu0 %v751_v1  ;;  %v757_v47 = vpack.c.bf16 %v327_v44, %v324_v43  ;;  %v330_v49 = vld [vmem:[#allocation11 + $0x60] sm:$0xff]  ;;  %v333_v50 = vld [vmem:[#allocation11 + $0x78] sm:$0xff]  ;;  %s316_s12 = scalar_lea.vmem [#allocation7], %s590_s11  ;;  %p93_p9 = scmp.ge.s32.totalorder %s96_s9, 8  }
 0x266   : > { %754 = vmatpush1.bf16.msra.mxu0 %v753_v41  ;;  %v759_v48 = vpack.c.bf16 %v334_v46, %v331_v45  ;;  %v337_v51 = vld [vmem:[#allocation11 + $0x98] sm:$0xff]  ;;  %v340_v52 = vld [vmem:[#allocation11 + $0xb0] sm:$0xff]  ;;  %v761_v53 = vpack.c.bf16 %v333_v50, %v330_v49  ;;  %v339_v56 = vld [vmem:[#allocation11 + $0xa8] sm:$0xff]  ;;  %s1064_s17 = smov (%p93_p9), [#allocation13]  }
 0x267   : > { %756 = vmatprep.subr.bf16.mxu0 %v755_v42  ;;  %v336_v54 = vld [vmem:[#allocation11 + $0x90] sm:$0xff]  ;;  %v763_v55 = vpack.c.bf16 %v340_v52, %v337_v51  ;;  %v323_v58 = vld [vmem:[#allocation11 + $0x28] sm:$0xff]  ;;  %v346_v60 = vld [vmem:[#allocation11 + $0xe0] sm:$0xff]  ;;  %s550_s18 = sshll.u32 (%p93_p9), %s1064_s17, 4  ;;  %s551_s18 = int_to_ptr.vmem [resolvable:$true] %s550_s18 }
 0x268   : > { %v320_v57 = vld [vmem:[#allocation11 + $0x10] sm:$0xff]  ;;  %v343_v59 = vld [vmem:[#allocation11 + $0xc8] sm:$0xff]  ;;  %v326_v62 = vld [vmem:[#allocation11 + $0x40] sm:$0xff]  ;;  %v765_v0 = vpack.c.bf16 %v339_v56, %v336_v54  ;;  %s980_s1 = scalar_lea.vmem (%p93_p9), %s551_s18, 256  ;;  %p985_p11 = scmp.lt.s32.totalorder (%p93_p9), %s551_s18, %s551_s18 }
 0x269   : > { %v784_v61 = vpack.c.bf16 %v323_v58, %v320_v57  ;;  %v329_v63 = vld [vmem:[#allocation11 + $0x58] sm:$0xff]  ;;  %v342_v3 = vld [vmem:[#allocation11 + $0xc0] sm:$0xff]  ;;  %v767_v5 = vpack.c.bf16 %v346_v60, %v343_v59  ;;  %v332_v7 = vld [vmem:[#allocation11 + $0x70] sm:$0xff]  ;;  %p981_p10 = scmp.ne.s32.totalorder (%p93_p9), %s551_s18, %s980_s1  ;;  %p986_p12 = scmp.lt.s32.totalorder (%p93_p9), %s980_s1, %s980_s1 }
 0x26a   : > { %758 = vmatpush1.bf16.msra.mxu0 %v757_v47  ;;  %v787_v4 = vpack.c.bf16 %v329_v63, %v326_v62  ;;  %v345_v6 = vld [vmem:[#allocation11 + $0xd8] sm:$0xff]  ;;  %v335_v8 = vld [vmem:[#allocation11 + $0x88] sm:$0xff]  ;;  %v352_v12 = vld [vmem:[#allocation11 + $0x110] sm:$0xff] }
 0x26b   : > { %760 = vmatprep.subr.bf16.mxu0 %v759_v48  ;;  %785 = vmatpush3.bf16.msra.mxu1 %v784_v61  ;;  %v349_v9 = vld [vmem:[#allocation11 + $0xf8] sm:$0xff]  ;;  %v769_v13 = vpack.c.bf16 %v345_v6, %v342_v3  ;;  %v348_v14 = vld [vmem:[#allocation11 + $0xf0] sm:$0xff]  ;;  %v790_v15 = vpack.c.bf16 %v335_v8, %v332_v7  ;;  %v351_v17 = vld [vmem:[#allocation11 + $0x108] sm:$0xff]  ;;  %p987_p13 = por (%p93_p9), %p986_p12, %p985_p11 }
 0x26c   : > { %786 = vmatprep.subr.bf16.mxu1 %v1061_v39  ;;  %v771_v16 = vpack.c.bf16 %v352_v12, %v349_v9  ;;  %v338_v18 = vld [vmem:[#allocation11 + $0xa0] sm:$0xff]  ;;  %v341_v19 = vld [vmem:[#allocation11 + $0xb8] sm:$0xff]  ;;  %v355_v20 = vld [vmem:[#allocation11 + $0x128] sm:$0xff]  ;;  %v773_v22 = vpack.c.bf16 %v351_v17, %v348_v14 }
 0x26d   : > { %v358_v21 = vld [vmem:[#allocation11 + $0x140] sm:$0xff]  ;;  %v793_v11 = vpack.c.bf16 %v341_v19, %v338_v18  ;;  %v357_v25 = vld [vmem:[#allocation11 + $0x138] sm:$0xff]  ;;  %v344_v26 = vld [vmem:[#allocation11 + $0xd0] sm:$0xff]  ;;  %p988_p0 = pnand (%p93_p9), %p987_p13, %p981_p10 }
 0x26e   : > { %762 = vmatpush1.bf16.msra.mxu0 %v761_v53  ;;  %v354_v23 = vld [vmem:[#allocation11 + $0x120] sm:$0xff]  ;;  %v775_v24 = vpack.c.bf16 %v358_v21, %v355_v20  ;;  %v347_v10 = vld [vmem:[#allocation11 + $0xe8] sm:$0xff]  ;;  %v361_v27 = vld [vmem:[#allocation11 + $0x158] sm:$0xff] }
 0x26f   : > { %764 = vmatprep.subr.bf16.mxu0 %v763_v55  ;;  %788 = vmatpush3.bf16.msra.mxu1 %v787_v4  ;;  %v364_v28 = vld [vmem:[#allocation11 + $0x170] sm:$0xff]  ;;  %v777_v29 = vpack.c.bf16 %v357_v25, %v354_v23  ;;  %v796_v31 = vpack.c.bf16 %v347_v10, %v344_v26  ;;  %v363_v33 = vld [vmem:[#allocation11 + $0x168] sm:$0xff]  ;;  %v350_v34 = vld [vmem:[#allocation11 + $0x100] sm:$0xff] }
 0x270   : > { %789 = vmatprep.subr.bf16.mxu1 %v1061_v39  ;;  %v360_v30 = vld [vmem:[#allocation11 + $0x150] sm:$0xff]  ;;  %v779_v32 = vpack.c.bf16 %v364_v28, %v361_v27  ;;  %v353_v35 = vld [vmem:[#allocation11 + $0x118] sm:$0xff]  ;;  %v359_v38 = vld [vmem:[#allocation11 + $0x148] sm:$0xff] }
 0x271   : > { %v781_v1 = vpack.c.bf16 %v363_v33, %v360_v30  ;;  %v799_v36 = vpack.c.bf16 %v353_v35, %v350_v34  ;;  %v356_v37 = vld [vmem:[#allocation11 + $0x130] sm:$0xff]  ;;  %v362_v41 = vld [vmem:[#allocation11 + $0x160] sm:$0xff]  ;;  %v365_v42 = vld [vmem:[#allocation11 + $0x178] sm:$0xff] }
 0x272   : > { %766 = vmatpush1.bf16.msra.mxu0 %v765_v0  ;;  %v802_v40 = vpack.c.bf16 %v359_v38, %v356_v37  ;;  %v805_v43 = vpack.c.bf16 %v365_v42, %v362_v41  ;;  %v317_v44 = vld [vmem:[%s316_s12] sm:$0x3f] }
 0x273   : > { %768 = vmatprep.subr.bf16.mxu0 %v767_v5  ;;  %791 = vmatpush3.bf16.msra.mxu1 %v790_v15  ;;  %v515_v46 = vrot.slane %v317_v44, 2  ;;  %v588_v56 = vld [vmem:[%s1244_s5] ss:$0 sm:$0xff]  ;;  %v533_v59 = vrot.slane %v317_v44, 4 }
 0x274   : > { %792 = vmatprep.subr.bf16.mxu1 %v1061_v39 }
 0x276   : > { %770 = vmatpush1.bf16.msra.mxu0 %v769_v13 }
 0x277   : > { %772 = vmatprep.subr.bf16.mxu0 %v771_v16  ;;  %794 = vmatpush3.bf16.msra.mxu1 %v793_v11 }
 0x278   : > { %795 = vmatprep.subr.bf16.mxu1 %v1061_v39 }
 0x27a   : > { %774 = vmatpush1.bf16.msra.mxu0 %v773_v22 }
 0x27b   : > { %776 = vmatprep.subr.bf16.mxu0 %v775_v24  ;;  %797 = vmatpush3.bf16.msra.mxu1 %v796_v31 }
 0x27c   : > { %798 = vmatprep.subr.bf16.mxu1 %v1061_v39 }
 0x27e   : > { %778 = vmatpush1.bf16.msra.mxu0 %v777_v29 }
 0x27f   : > { %780 = vmatprep.subr.bf16.mxu0 %v779_v32  ;;  %800 = vmatpush3.bf16.msra.mxu1 %v799_v36 }
 0x280   : > { %801 = vmatprep.subr.bf16.mxu1 %v1061_v39 }
 0x282   : > { %782 = vmatpush1.bf16.msra.mxu0 %v781_v1 }
 0x283   : > { %803 = vmatpush3.bf16.msra.mxu1 %v802_v40 }
 0x284   : > { %804 = vmatprep.subr.bf16.mxu1 %v1061_v39 }
 0x285   : > { %431 = vmatmul.mubr.f32.vlgmr.msra.gmra.mrb[0].mxu0 %v1042_v2 }
 0x287   : > { %806 = vmatpush3.bf16.msra.mxu1 %v805_v43 }
 0x28a   : > { %693 = vmatmul.mubr.f32.vlgmr.msra.gmra.mrb[0].mxu1 %v1042_v2 }
 0x358   : > { %v432_v45 = vpop.f32.mrb[0].mxu0 }
 0x359   : > { %v507_v47 = vadd.f32 %v432_v45, %v317_v44  ;;  %v434_v48 = vpop.f32.mrb[1].mxu0 }
 0x35a   : > { %v517_v50 = vadd.f32 %v515_v46, %v434_v48 }
 0x35b   : > { %v586_v49 = vmul.f32 -1.442695, %v507_v47 }
 0x35c   : > { %v587_v51 = vmul.f32 -1.442695, %v517_v50 }
 0x35d   : > { %872 = vpow2.f32 %v586_v49  ;;  %v503_v52 = vpop.f32.mrb[0].mxu1 }
 0x35e   : > { %v694_v53 = vpop.f32.mrb[1].mxu1  ;;  %874 = vpow2.f32 %v587_v51  ;;  %v531_v58 = vadd.f32 %v588_v56, %v503_v52 }
 0x367   : > { %v873_v54 = vpop.eup %872 }
 0x368   : > { %v511_v39 = vadd.f32 1.0, %v873_v54  ;;  %v875_v55 = vpop.eup %874 }
 0x369   : > { %v521_v57 = vadd.f32 1.0, %v875_v55 }
 0x36a   : > { %876 = vrcp.f32 %v511_v39 }
 0x36b   : > { %878 = vrcp.f32 %v521_v57 }
 0x374   : > { %v877_v60 = vpop.eup %876 }
 0x375   : > { %v532_v61 = vmul.f32 %v877_v60, %v531_v58  ;;  %v879_v63 = vpop.eup %878 }
 0x376   : > { %v537_v0 = vsub.f32 1.0, %v879_v63  ;;  %v539_v4 = vmul.f32 %v1042_v2, %v879_v63 }
 0x377   : > { %v535_v62 = vadd.f32 %v533_v59, %v532_v61 }
 0x379   : > { %880 = vtanh.f32 %v535_v62 }
 0x382   :  { %95 = sbr.rel (!%p93_p9) target bundleno = 90 (0x5a), region = 91 }
 0x383   : > { %v881_v3 = vpop.eup %880 }
 0x384   : > { %v538_v5 = vmul.f32 %v881_v3, %v537_v0 }
 0x386   : > { %v540_v6 = vadd.f32 %v539_v4, %v538_v5 }
 0x388   : > { %541 = vst [vmem:[#allocation2] sm:$0x3] %v540_v6  ;;  %544 = vst [vmem:[%s543_s16] sm:$0x3] %v540_v6 }
 0x389   :  { %991 = shalt.err (!%p988_p0)
}
 0x38a   :  { %s992_s2 = scalar_lea.hbm %s1245_s6, 256 }
 0x38b   :  { %p993_p1 = scmp.ne.s32.totalorder %s1245_s6, %s992_s2  ;;  %p996_p2 = scmp.lt.u32.totalorder %s992_s2, %s1245_s6 }
 0x38d   :  { %p998_p3 = pnand %p996_p2, %p993_p1 }
 0x38f   :  { %1001 = shalt.err (!%p998_p3)
}
 0x390   :  { %s1065_s5 = smov 32   ;;  %s1066_s25 = smov 2  }
 0x391   :  { %556 = dma.vmem_to_hbm [thread:$0]  %s551_s18, 256, %s1245_s6, [#allocation5], %s1065_s5, %s1065_s5, %s1066_s25  }
 0x392   :  { %1026 = dma.done.wait [#allocation5], 256  }
 0x393   :  { %1027 = vsyncadd [#allocation5], 4294967040 }
 0x394   :  { %560 = vsyncpa [#allocation4], 1 }
 0x395   :  { %561 = vsyncpa [#allocation9], 1 }
 0x396   :  { %562 = vsyncpa [#allocation12], 1 }
 0x397   :  { %563 = vsyncpa [#allocation5], 1 }
 0x398   :  { %564 = vsyncpa [#allocation6], 1 }

</bundles_post_ra>
